<compile_context>
chip_gen: v6e
topology: v6e:2x2x1
jax: 0.10.0
libtpu: 0.0.40
codegen_flags: <defaults>
</compile_context>

<pallas_src>
import functools

import jax
import jax.numpy as jnp
from jax.experimental import pallas as pl
from jax.experimental.pallas import tpu as pltpu


def _point_classifier_kernel(x_ref, w1_ref, b1_ref, w2_ref, b2_ref,
                             w3_ref, b3_ref, wc_ref, bc_ref,
                             logits_ref, feat_ref, acc_ref, *, n_points):
    """One (batch b, point-tile n) grid step.

    x_ref:    (TN, Din)   current point tile of batch b
    feat_ref: (TN, 256)   per-point features (output tile)
    logits_ref: (1, Cp)   logits row for batch b (written at last point tile)
    acc_ref:  (1, 256)    running sum of feat over this batch's points
    """
    n = pl.program_id(1)
    n_last = pl.num_programs(1) - 1

    @pl.when(n == 0)
    def _init():
        acc_ref[...] = jnp.zeros_like(acc_ref)

    x = x_ref[...]                       # (TN, Din) f32
    din = x.shape[-1]

    # ---- Layer 1: Linear(Din -> 64) + ReLU -------------------------------
    # Din is tiny (3): an MXU pass would run at K-utilization Din/128, so do
    # it as Din VPU broadcast-FMAs instead (static unroll, Din is trace-time).
    if din <= 8:
        w1 = w1_ref[...]                                       # (Din, H1)
        h = x[:, 0:1] * w1[0:1, :] + b1_ref[...]               # (TN, H1)
        for d in range(1, din):
            h = h + x[:, d:d + 1] * w1[d:d + 1, :]
    else:
        h = jnp.dot(x, w1_ref[...], preferred_element_type=jnp.float32) + b1_ref[...]
    h = jnp.maximum(h, 0.0)

    # ---- Layer 2: Linear(64 -> 128) + ReLU (MXU) -------------------------
    h = jnp.dot(h, w2_ref[...], preferred_element_type=jnp.float32) + b2_ref[...]
    h = jnp.maximum(h, 0.0)

    # ---- Layer 3: Linear(128 -> 256) + ReLU (MXU) ------------------------
    feat = jnp.dot(h, w3_ref[...], preferred_element_type=jnp.float32) + b3_ref[...]
    feat = jnp.maximum(feat, 0.0)                              # (TN, 256)

    feat_ref[...] = feat.astype(feat_ref.dtype)

    # ---- Mean pooling: accumulate per-batch sum (no dense pool matrix) ----
    acc_ref[...] += jnp.sum(feat, axis=0, keepdims=True)       # (1, 256)

    # ---- Classifier head on the last point tile of this batch -------------
    @pl.when(n == n_last)
    def _finalize():
        gfeat = acc_ref[...] * (1.0 / n_points)                # (1, 256)
        logits = jnp.dot(gfeat, wc_ref[...],
                         preferred_element_type=jnp.float32) + bc_ref[...]
        logits_ref[...] = logits.astype(logits_ref.dtype)


def _choose_point_tile(n, max_tile=2048):
    """Largest multiple-of-8 divisor of n that is <= max_tile, else n (full)."""
    t = min(n, max_tile)
    t -= t % 8
    while t >= 8:
        if n % t == 0:
            return t
        t -= 8
    return n


def point_classifier_forward(x, w1, b1, w2, b2, w3, b3, wc, bc, *, tile_points=None):
    """x: (B, N, Din) f32.  Linear weights stored pre-transposed as (in, out)."""
    B, N, Din = x.shape
    H1, H2, H3 = w1.shape[1], w2.shape[1], w3.shape[1]
    C = wc.shape[1]

    TN = tile_points if tile_points is not None else _choose_point_tile(N)
    assert N % TN == 0, "point tile must divide N"
    NT = N // TN

    # Pad the class dim up to a lane multiple: lane-dense wc tile, unmasked
    # logits store.  Sliced back to C below.
    Cp = ((C + 127) // 128) * 128
    wc_p = jnp.pad(wc, ((0, 0), (0, Cp - C)))
    bc_p = jnp.pad(bc, (0, Cp - C)).reshape(1, Cp)

    # Biases as 2D rows for clean TPU broadcasting.
    b1r = b1.reshape(1, H1)
    b2r = b2.reshape(1, H2)
    b3r = b3.reshape(1, H3)

    const = lambda b, n: (0, 0)   # weights/biases: DMA'd once, resident

    kernel = functools.partial(_point_classifier_kernel, n_points=N)

    logits_p, feat = pl.pallas_call(
        kernel,
        out_shape=(
            jax.ShapeDtypeStruct((B, 1, Cp), x.dtype),   # logits (padded classes)
            jax.ShapeDtypeStruct((B, N, H3), x.dtype),   # per-point features
        ),
        grid=(B, NT),
        in_specs=[
            pl.BlockSpec((None, TN, Din), lambda b, n: (b, n, 0)),   # x tile
            pl.BlockSpec((Din, H1), const),                          # W1
            pl.BlockSpec((1, H1), const),                            # b1
            pl.BlockSpec((H1, H2), const),                           # W2
            pl.BlockSpec((1, H2), const),                            # b2
            pl.BlockSpec((H2, H3), const),                           # W3
            pl.BlockSpec((1, H3), const),                            # b3
            pl.BlockSpec((H3, Cp), const),                           # W_cls (padded)
            pl.BlockSpec((1, Cp), const),                            # b_cls (padded)
        ],
        out_specs=(
            pl.BlockSpec((None, 1, Cp), lambda b, n: (b, 0, 0)),     # logits row
            pl.BlockSpec((None, TN, H3), lambda b, n: (b, n, 0)),    # feat tile
        ),
        scratch_shapes=[pltpu.VMEM((1, H3), jnp.float32)],           # pooled-sum acc
        compiler_params=pltpu.CompilerParams(
            dimension_semantics=("parallel", "arbitrary"),
        ),
    )(x, w1, b1r, w2, b2r, w3, b3r, wc_p, bc_p)

    logits = logits_p[:, 0, :C]
    return logits, feat


def reference(x, w1, b1, w2, b2, w3, b3, wc, bc):
    h = jax.nn.relu(jnp.einsum("bnd,de->bne", x, w1) + b1)
    h = jax.nn.relu(jnp.einsum("bnd,de->bne", h, w2) + b2)
    feat = jax.nn.relu(jnp.einsum("bnd,de->bne", h, w3) + b3)
    gfeat = feat.mean(axis=1)
    logits = gfeat @ wc + bc
    return logits, feat


if __name__ == "__main__":
    B, N, Din, num_classes = 2, 16, 3, 50
    H1, H2, H3 = 64, 128, 256

    key = jax.random.PRNGKey(0)
    keys = jax.random.split(key, 9)

    x = jax.random.normal(keys[0], (B, N, Din), dtype=jnp.float32)

    def linear_init(kw, kb, fan_in, fan_out):
        # Mimic PyTorch nn.Linear default init; weight stored transposed (in, out).
        s = 1.0 / (fan_in ** 0.5)
        w = jax.random.uniform(kw, (fan_in, fan_out), jnp.float32, -s, s)
        b = jax.random.uniform(kb, (fan_out,), jnp.float32, -s, s)
        return w, b

    w1, b1 = linear_init(keys[1], keys[2], Din, H1)
    w2, b2 = linear_init(keys[3], keys[4], H1, H2)
    w3, b3 = linear_init(keys[5], keys[6], H2, H3)
    wc, bc = linear_init(keys[7], keys[8], H3, num_classes)

    # tile_points=8 -> 2 point-tiles per batch: exercises the accumulator
    # init/accumulate/finalize path and the x/feat pipelining.
    logits, feat = point_classifier_forward(
        x, w1, b1, w2, b2, w3, b3, wc, bc, tile_points=8)
    logits = jax.block_until_ready(logits)
    feat = jax.block_until_ready(feat)

    ref_logits, ref_feat = reference(x, w1, b1, w2, b2, w3, b3, wc, bc)
    assert jnp.allclose(logits, ref_logits, atol=1e-4, rtol=1e-4), "logits mismatch"
    assert jnp.allclose(feat, ref_feat, atol=1e-4, rtol=1e-4), "feat mismatch"
    print("KERNEL_OK")
</pallas_src>

<mosaic_0001>
module attributes {stable_mosaic.version = 11 : i64} {
  func.func @_point_classifier_kernel(%arg0: i32, %arg1: i32, %arg2: memref<1x8x3xf32, #tpu.memory_space<vmem>>, %arg3: memref<3x64xf32, #tpu.memory_space<vmem>>, %arg4: memref<1x64xf32, #tpu.memory_space<vmem>>, %arg5: memref<64x128xf32, #tpu.memory_space<vmem>>, %arg6: memref<1x128xf32, #tpu.memory_space<vmem>>, %arg7: memref<128x256xf32, #tpu.memory_space<vmem>>, %arg8: memref<1x256xf32, #tpu.memory_space<vmem>>, %arg9: memref<256x128xf32, #tpu.memory_space<vmem>>, %arg10: memref<1x128xf32, #tpu.memory_space<vmem>>, %arg11: memref<1x1x128xf32, #tpu.memory_space<vmem>>, %arg12: memref<1x8x256xf32, #tpu.memory_space<vmem>>, %arg13: memref<1x256xf32, #tpu.memory_space<vmem>>) attributes {dimension_semantics = [#tpu.dimension_semantics<parallel>, #tpu.dimension_semantics<arbitrary>], iteration_bounds = array<i64: 2, 2>, scalar_prefetch = 0 : i64, scratch_operands = 1 : i64, tpu.core_type = #tpu.core_type<tc>, window_params = [{transform_indices = @transform_0, window_bounds = array<i64: 1, 8, 3>}, {pipeline_mode = #tpu.pipeline_mode<synchronous>, transform_indices = @transform_1, window_bounds = array<i64: 3, 64>}, {pipeline_mode = #tpu.pipeline_mode<synchronous>, transform_indices = @transform_2, window_bounds = array<i64: 1, 64>}, {pipeline_mode = #tpu.pipeline_mode<synchronous>, transform_indices = @transform_3, window_bounds = array<i64: 64, 128>}, {pipeline_mode = #tpu.pipeline_mode<synchronous>, transform_indices = @transform_4, window_bounds = array<i64: 1, 128>}, {pipeline_mode = #tpu.pipeline_mode<synchronous>, transform_indices = @transform_5, window_bounds = array<i64: 128, 256>}, {pipeline_mode = #tpu.pipeline_mode<synchronous>, transform_indices = @transform_6, window_bounds = array<i64: 1, 256>}, {pipeline_mode = #tpu.pipeline_mode<synchronous>, transform_indices = @transform_7, window_bounds = array<i64: 256, 128>}, {pipeline_mode = #tpu.pipeline_mode<synchronous>, transform_indices = @transform_8, window_bounds = array<i64: 1, 128>}, {transform_indices = @transform_9, window_bounds = array<i64: 1, 1, 128>}, {transform_indices = @transform_10, window_bounds = array<i64: 1, 8, 256>}]} {
    %c0_i32 = arith.constant 0 : i32
    %0 = arith.cmpi eq, %arg1, %c0_i32 : i32
    %1 = arith.extui %0 : i1 to i32
    %c0_i32_0 = arith.constant 0 : i32
    %2 = arith.cmpi ne, %1, %c0_i32_0 : i32
    scf.if %2 {
      %cst_28 = arith.constant 0.000000e+00 : f32
      %53 = vector.broadcast %cst_28 : f32 to vector<1x256xf32>
      %c0_29 = arith.constant 0 : index
      %c0_30 = arith.constant 0 : index
      %54 = vector.load %arg13[%c0_29, %c0_30] : memref<1x256xf32, #tpu.memory_space<vmem>>, vector<1x256xf32>
      tpu.vector_store %arg13[%c0_29, %c0_30], %53 {strides = array<i32>} : memref<1x256xf32, #tpu.memory_space<vmem>>, vector<1x256xf32>,
    } else {
    }
    %c0 = arith.constant 0 : index
    %c0_1 = arith.constant 0 : index
    %c0_2 = arith.constant 0 : index
    %3 = vector.load %arg2[%c0, %c0_1, %c0_2] : memref<1x8x3xf32, #tpu.memory_space<vmem>>, vector<1x8x3xf32>
    %4 = vector.shape_cast %3 : vector<1x8x3xf32> to vector<8x3xf32>
    %c0_3 = arith.constant 0 : index
    %c0_4 = arith.constant 0 : index
    %5 = vector.load %arg3[%c0_3, %c0_4] : memref<3x64xf32, #tpu.memory_space<vmem>>, vector<3x64xf32>
    %6 = vector.extract_strided_slice %4 {offsets = [0, 0], sizes = [8, 1], strides = [1, 1]} : vector<8x3xf32> to vector<8x1xf32>
    %7 = vector.extract_strided_slice %5 {offsets = [0, 0], sizes = [1, 64], strides = [1, 1]} : vector<3x64xf32> to vector<1x64xf32>
    %8 = vector.broadcast %6 : vector<8x1xf32> to vector<8x64xf32>
    %9 = vector.broadcast %7 : vector<1x64xf32> to vector<8x64xf32>
    %10 = arith.mulf %8, %9 : vector<8x64xf32>
    %c0_5 = arith.constant 0 : index
    %c0_6 = arith.constant 0 : index
    %11 = vector.load %arg4[%c0_5, %c0_6] : memref<1x64xf32, #tpu.memory_space<vmem>>, vector<1x64xf32>
    %12 = vector.broadcast %11 : vector<1x64xf32> to vector<8x64xf32>
    %13 = arith.addf %10, %12 : vector<8x64xf32>
    %14 = vector.extract_strided_slice %4 {offsets = [0, 1], sizes = [8, 1], strides = [1, 1]} : vector<8x3xf32> to vector<8x1xf32>
    %15 = vector.extract_strided_slice %5 {offsets = [1, 0], sizes = [1, 64], strides = [1, 1]} : vector<3x64xf32> to vector<1x64xf32>
    %16 = vector.broadcast %14 : vector<8x1xf32> to vector<8x64xf32>
    %17 = vector.broadcast %15 : vector<1x64xf32> to vector<8x64xf32>
    %18 = arith.mulf %16, %17 : vector<8x64xf32>
    %19 = arith.addf %13, %18 : vector<8x64xf32>
    %20 = vector.extract_strided_slice %4 {offsets = [0, 2], sizes = [8, 1], strides = [1, 1]} : vector<8x3xf32> to vector<8x1xf32>
    %21 = vector.extract_strided_slice %5 {offsets = [2, 0], sizes = [1, 64], strides = [1, 1]} : vector<3x64xf32> to vector<1x64xf32>
    %22 = vector.broadcast %20 : vector<8x1xf32> to vector<8x64xf32>
    %23 = vector.broadcast %21 : vector<1x64xf32> to vector<8x64xf32>
    %24 = arith.mulf %22, %23 : vector<8x64xf32>
    %25 = arith.addf %19, %24 : vector<8x64xf32>
    %cst = arith.constant 0.000000e+00 : f32
    %26 = vector.broadcast %cst : f32 to vector<8x64xf32>
    %27 = arith.maximumf %25, %26 : vector<8x64xf32>
    %c0_7 = arith.constant 0 : index
    %c0_8 = arith.constant 0 : index
    %28 = vector.load %arg5[%c0_7, %c0_8] : memref<64x128xf32, #tpu.memory_space<vmem>>, vector<64x128xf32>
    %cst_9 = arith.constant dense<0.000000e+00> : vector<8x128xf32>
    %29 = tpu.matmul %27, %28, %cst_9 {dimension_numbers = #tpu.dot_dimension_numbers<[1], [0], [0], [1], [0, 0, 1, 1], [], []>} : vector<8x64xf32>, vector<64x128xf32>, vector<8x128xf32> -> vector<8x128xf32>
    %c0_10 = arith.constant 0 : index
    %c0_11 = arith.constant 0 : index
    %30 = vector.load %arg6[%c0_10, %c0_11] : memref<1x128xf32, #tpu.memory_space<vmem>>, vector<1x128xf32>
    %31 = vector.broadcast %30 : vector<1x128xf32> to vector<8x128xf32>
    %32 = arith.addf %29, %31 : vector<8x128xf32>
    %cst_12 = arith.constant 0.000000e+00 : f32
    %33 = vector.broadcast %cst_12 : f32 to vector<8x128xf32>
    %34 = arith.maximumf %32, %33 : vector<8x128xf32>
    %c0_13 = arith.constant 0 : index
    %c0_14 = arith.constant 0 : index
    %35 = vector.load %arg7[%c0_13, %c0_14] : memref<128x256xf32, #tpu.memory_space<vmem>>, vector<128x256xf32>
    %cst_15 = arith.constant dense<0.000000e+00> : vector<8x256xf32>
    %36 = tpu.matmul %34, %35, %cst_15 {dimension_numbers = #tpu.dot_dimension_numbers<[1], [0], [0], [1], [0, 0, 1, 1], [], []>} : vector<8x128xf32>, vector<128x256xf32>, vector<8x256xf32> -> vector<8x256xf32>
    %c0_16 = arith.constant 0 : index
    %c0_17 = arith.constant 0 : index
    %37 = vector.load %arg8[%c0_16, %c0_17] : memref<1x256xf32, #tpu.memory_space<vmem>>, vector<1x256xf32>
    %38 = vector.broadcast %37 : vector<1x256xf32> to vector<8x256xf32>
    %39 = arith.addf %36, %38 : vector<8x256xf32>
    %cst_18 = arith.constant 0.000000e+00 : f32
    %40 = vector.broadcast %cst_18 : f32 to vector<8x256xf32>
    %41 = arith.maximumf %39, %40 : vector<8x256xf32>
    %c0_19 = arith.constant 0 : index
    %c0_20 = arith.constant 0 : index
    %c0_21 = arith.constant 0 : index
    %42 = vector.load %arg12[%c0_19, %c0_20, %c0_21] : memref<1x8x256xf32, #tpu.memory_space<vmem>>, vector<1x8x256xf32>
    %43 = vector.shape_cast %42 : vector<1x8x256xf32> to vector<8x256xf32>
    %44 = vector.shape_cast %41 : vector<8x256xf32> to vector<1x8x256xf32>
    tpu.vector_store %arg12[%c0_19, %c0_20, %c0_21], %44 {strides = array<i32>} : memref<1x8x256xf32, #tpu.memory_space<vmem>>, vector<1x8x256xf32>,
    %c0_22 = arith.constant 0 : index
    %c0_23 = arith.constant 0 : index
    %45 = vector.load %arg13[%c0_22, %c0_23] : memref<1x256xf32, #tpu.memory_space<vmem>>, vector<1x256xf32>
    %cst_24 = arith.constant dense<0.000000e+00> : vector<256xf32>
    %46 = vector.multi_reduction <add>, %41, %cst_24 [0] : vector<8x256xf32> to vector<256xf32>
    %47 = vector.shape_cast %46 : vector<256xf32> to vector<1x256xf32>
    %48 = arith.addf %45, %47 : vector<1x256xf32>
    %c0_25 = arith.constant 0 : index
    %c0_26 = arith.constant 0 : index
    %49 = vector.load %arg13[%c0_25, %c0_26] : memref<1x256xf32, #tpu.memory_space<vmem>>, vector<1x256xf32>
    tpu.vector_store %arg13[%c0_25, %c0_26], %48 {strides = array<i32>} : memref<1x256xf32, #tpu.memory_space<vmem>>, vector<1x256xf32>,
    %c1_i32 = arith.constant 1 : i32
    %50 = arith.cmpi eq, %arg1, %c1_i32 : i32
    %51 = arith.extui %50 : i1 to i32
    %c0_i32_27 = arith.constant 0 : i32
    %52 = arith.cmpi ne, %51, %c0_i32_27 : i32
    scf.if %52 {
      %c0_28 = arith.constant 0 : index
      %c0_29 = arith.constant 0 : index
      %53 = vector.load %arg13[%c0_28, %c0_29] : memref<1x256xf32, #tpu.memory_space<vmem>>, vector<1x256xf32>
      %cst_30 = arith.constant 6.250000e-02 : f32
      %54 = vector.broadcast %cst_30 : f32 to vector<1x256xf32>
      %55 = arith.mulf %53, %54 : vector<1x256xf32>
      %c0_31 = arith.constant 0 : index
      %c0_32 = arith.constant 0 : index
      %56 = vector.load %arg9[%c0_31, %c0_32] : memref<256x128xf32, #tpu.memory_space<vmem>>, vector<256x128xf32>
      %cst_33 = arith.constant dense<0.000000e+00> : vector<1x128xf32>
      %57 = tpu.matmul %55, %56, %cst_33 {dimension_numbers = #tpu.dot_dimension_numbers<[1], [0], [0], [1], [0, 0, 1, 1], [], []>} : vector<1x256xf32>, vector<256x128xf32>, vector<1x128xf32> -> vector<1x128xf32>
      %c0_34 = arith.constant 0 : index
      %c0_35 = arith.constant 0 : index
      %58 = vector.load %arg10[%c0_34, %c0_35] : memref<1x128xf32, #tpu.memory_space<vmem>>, vector<1x128xf32>
      %59 = arith.addf %57, %58 : vector<1x128xf32>
      %c0_36 = arith.constant 0 : index
      %c0_37 = arith.constant 0 : index
      %c0_38 = arith.constant 0 : index
      %60 = vector.load %arg11[%c0_36, %c0_37, %c0_38] : memref<1x1x128xf32, #tpu.memory_space<vmem>>, vector<1x1x128xf32>
      %61 = vector.shape_cast %60 : vector<1x1x128xf32> to vector<1x128xf32>
      %62 = vector.shape_cast %59 : vector<1x128xf32> to vector<1x1x128xf32>
      tpu.vector_store %arg11[%c0_36, %c0_37, %c0_38], %62 {strides = array<i32>} : memref<1x1x128xf32, #tpu.memory_space<vmem>>, vector<1x1x128xf32>,
    } else {
    }
    return
  }
  func.func @transform_0(%arg0: i32, %arg1: i32) -> (i32, i32, i32) {
    %c0_i32 = arith.constant 0 : i32
    %c0_i32_0 = arith.constant 0 : i32
    return %arg0, %arg1, %c0_i32 : i32, i32, i32
  }
  func.func @transform_1(%arg0: i32, %arg1: i32) -> (i32, i32) {
    %c0_i32 = arith.constant 0 : i32
    %c0_i32_0 = arith.constant 0 : i32
    %c0_i32_1 = arith.constant 0 : i32
    return %c0_i32, %c0_i32_0 : i32, i32
  }
  func.func @transform_2(%arg0: i32, %arg1: i32) -> (i32, i32) {
    %c0_i32 = arith.constant 0 : i32
    %c0_i32_0 = arith.constant 0 : i32
    %c0_i32_1 = arith.constant 0 : i32
    return %c0_i32, %c0_i32_0 : i32, i32
  }
  func.func @transform_3(%arg0: i32, %arg1: i32) -> (i32, i32) {
    %c0_i32 = arith.constant 0 : i32
    %c0_i32_0 = arith.constant 0 : i32
    %c0_i32_1 = arith.constant 0 : i32
    return %c0_i32, %c0_i32_0 : i32, i32
  }
  func.func @transform_4(%arg0: i32, %arg1: i32) -> (i32, i32) {
    %c0_i32 = arith.constant 0 : i32
    %c0_i32_0 = arith.constant 0 : i32
    %c0_i32_1 = arith.constant 0 : i32
    return %c0_i32, %c0_i32_0 : i32, i32
  }
  func.func @transform_5(%arg0: i32, %arg1: i32) -> (i32, i32) {
    %c0_i32 = arith.constant 0 : i32
    %c0_i32_0 = arith.constant 0 : i32
    %c0_i32_1 = arith.constant 0 : i32
    return %c0_i32, %c0_i32_0 : i32, i32
  }
  func.func @transform_6(%arg0: i32, %arg1: i32) -> (i32, i32) {
    %c0_i32 = arith.constant 0 : i32
    %c0_i32_0 = arith.constant 0 : i32
    %c0_i32_1 = arith.constant 0 : i32
    return %c0_i32, %c0_i32_0 : i32, i32
  }
  func.func @transform_7(%arg0: i32, %arg1: i32) -> (i32, i32) {
    %c0_i32 = arith.constant 0 : i32
    %c0_i32_0 = arith.constant 0 : i32
    %c0_i32_1 = arith.constant 0 : i32
    return %c0_i32, %c0_i32_0 : i32, i32
  }
  func.func @transform_8(%arg0: i32, %arg1: i32) -> (i32, i32) {
    %c0_i32 = arith.constant 0 : i32
    %c0_i32_0 = arith.constant 0 : i32
    %c0_i32_1 = arith.constant 0 : i32
    return %c0_i32, %c0_i32_0 : i32, i32
  }
  func.func @transform_9(%arg0: i32, %arg1: i32) -> (i32, i32, i32) {
    %c0_i32 = arith.constant 0 : i32
    %c0_i32_0 = arith.constant 0 : i32
    %c0_i32_1 = arith.constant 0 : i32
    return %arg0, %c0_i32, %c0_i32_0 : i32, i32, i32
  }
  func.func @transform_10(%arg0: i32, %arg1: i32) -> (i32, i32, i32) {
    %c0_i32 = arith.constant 0 : i32
    %c0_i32_0 = arith.constant 0 : i32
    return %arg0, %arg1, %c0_i32 : i32, i32, i32
  }
}

</mosaic_0001>

<bundles_post_ra>
// kernel: tpu_custom_call.1
= control target key start
LH: loop header
LB: loop body
LE: loop exit
PB: predicated region body
PF: predicated region fallthrough
CT: control target
= control target key end

     0   :  { %s1874_s0 = inlined_call_operand.vmem [shape: f32[2,16,3], index: 0, kind: input, shape index: {}]   ;;  %s1875_s1 = inlined_call_operand.vmem [shape: f32[3,64], index: 1, kind: input, shape index: {}]   ;;  %s1876_s2 = inlined_call_operand.vmem [shape: f32[1,64], index: 2, kind: input, shape index: {}]   ;;  %s1877_s3 = inlined_call_operand.hbm [shape: f32[64,128], index: 3, kind: input, shape index: {}]   ;;  %s1878_s4 = inlined_call_operand.vmem [shape: f32[1,128], index: 4, kind: input, shape index: {}]   ;;  %s1879_s5 = inlined_call_operand.hbm [shape: f32[128,256], index: 5, kind: input, shape index: {}]   ;;  %s1880_s6 = inlined_call_operand.vmem [shape: f32[1,256], index: 6, kind: input, shape index: {}]   ;;  %s1881_s7 = inlined_call_operand.hbm [shape: f32[256,128], index: 7, kind: input, shape index: {}]   ;;  %s1882_s8 = inlined_call_operand.vmem [shape: f32[1,128], index: 8, kind: input, shape index: {}]   ;;  %s1883_s9 = inlined_call_operand.hbm [shape: f32[2,1,128], index: 9, kind: output, shape index: {0}]   ;;  %s1884_s10 = inlined_call_operand.hbm [shape: f32[2,16,256], index: 10, kind: output, shape index: {1}]  }
   0x1   :  { %1899 = sst [smem:[#allocation26_spill]] %s1874_s0 }
   0x2   :  { %1900 = sst [smem:[#allocation27_spill]] %s1875_s1 }
   0x3   :  { %1901 = sst [smem:[#allocation28_spill]] %s1876_s2 }
   0x4   :  { %1902 = sst [smem:[#allocation29_spill]] %s1877_s3 }
   0x5   :  { %1903 = sst [smem:[#allocation30_spill]] %s1878_s4 }
   0x6   :  { %1904 = sst [smem:[#allocation31_spill]] %s1879_s5 }
   0x7   :  { %1905 = sst [smem:[#allocation32_spill]] %s1883_s9 }
   0x8   :  { %1906 = sst [smem:[#allocation33_spill]] %s1884_s10 }
   0x9   :  { %16 = vsyncpa [#allocation4], 0 }
   0xa   :  { %17 = vsyncpa [#allocation7], 0 }
   0xb   :  { %18 = vsyncpa [#allocation5], 0 }
   0xc   :  { %20 = vsyncpa [#allocation5 + $0x1], 0 }
   0xd   :  { %21 = vsyncpa [#allocation11], 0 }
   0xe   :  { %23 = vsyncpa [#allocation11 + $0x1], 0  ;;  %s1566_s13 = smov 0   ;;  %s1568_s14 = smov 0  }
   0xf   :  { %s1570_s15 = smov 0   ;;  %s1572_s16 = smov 0  }
  0x10   :  { %s1574_s17 = smov 0   ;;  %s1576_s18 = smov 0  }
  0x11   :  { %s1578_s19 = smov 0   ;;  %s1580_s20 = smov 0  }
  0x12   :  { %s1582_s21 = smov 0   ;;  %s1584_s22 = smov 0  }
  0x13   :  { %s1586_s23 = smov 0  }
  0x14 LB: > { %1907 = sst [smem:[#allocation16_spill]] %s1461_s15  ;;  %s1885_s24 = sadd.s32 4294967295, %s1493_s23   ;;  %s1493_s23 = sphi %s1586_s23, %s29_s23   ;;  %s1489_s22 = sphi %s1584_s22, %s1949_s22   ;;  %s1485_s21 = sphi %s1582_s21, %s1948_s21   ;;  %s1481_s20 = sphi %s1580_s20, %s1947_s20   ;;  %s1477_s19 = sphi %s1578_s19, %s1946_s19   ;;  %s1473_s18 = sphi %s1576_s18, %s1945_s18   ;;  %s1469_s17 = sphi %s1574_s17, %s1953_s17   ;;  %s1465_s16 = sphi %s1572_s16, %s1952_s16   ;;  %s1461_s15 = sphi %s1570_s15, %s1943_s15   ;;  %s1457_s14 = sphi %s1568_s14, %s1951_s14   ;;  %s1453_s13 = sphi %s1566_s13, %s1950_s13  }
  0x15   : > { %1908 = sst [smem:[#allocation17_spill]] %s1465_s16  ;;  %s1027_s25 = sadd.s32 4294967294, %s1493_s23  }
  0x16   : > { %1909 = sst [smem:[#allocation18_spill]] %s1473_s18  ;;  %s38_s26 = sadd.s32 1, %s1485_s21 }
  0x17   : > { %1910 = sst [smem:[#allocation19_spill]] %s1485_s21  ;;  %s41_s27 = sadd.s32 1, %s1489_s22 }
  0x18   : > { %1911 = sst [smem:[#allocation20_spill]] %s1489_s22  ;;  %p39_p0 = scmp.ge.s32.totalorder %s38_s26, 2 }
  0x19   : > { %s244_s28 = sadd.s32 1, %s1473_s18  ;;  %p254_p1 = scmp.ne.s32.totalorder %s1473_s18, %s1469_s17 }
  0x1a   : > { %p1630_p2 = scmp.eq.s32.totalorder %s1885_s24, 3  ;;  %s1955_s26 = smov (%p39_p0, %s38_s26), 0 }
  0x1b   : > { %1913 = sst [smem:[#allocation21_spill]] %s1955_s26  ;;  %s1957_s27 = smov (!%p39_p0, %s41_s27), %s1489_s22 }
  0x1c   : > { %p1639_p3 = por %p1630_p2, %p254_p1  ;;  %p260_p4 = scmp.ne.s32.totalorder %s1469_s17, %s1465_s16 }
  0x1d   : > { %p43_p5 = scmp.ge.s32.totalorder %s1957_s27, 2  ;;  %p1645_p6 = scmp.eq.s32.totalorder %s1027_s25, 3 }
  0x1e   : > { %s1914_s30 = scalar_select %p1639_p3, 1, 0 }
  0x1f   : > { %s268_s12 = ssub.s32 %s1485_s21, %s1955_s26  ;;  %s272_s24 = sadd.s32 1, %s1461_s15 }
  0x20   : > { %1915 = sst [smem:[#allocation22_spill]] %s1914_s30  ;;  %s1959_s27 = smov (%p43_p5, %s1957_s27), 0 }
  0x21   : > { %1917 = sst [smem:[#allocation23_spill]] %s1959_s27  ;;  %p1656_p7 = por %p1645_p6, %p260_p4 }
  0x22   : > { %p282_p8 = scmp.ne.s32.totalorder %s1461_s15, %s1457_s14  ;;  %s241_s16 = ssub.s32 %s1489_s22, %s1959_s27 }
  0x23   : > { %s1918_s10 = scalar_select %p1656_p7, 1, 0 }
  0x24   : > { %p288_p9 = scmp.ne.s32.totalorder %s1457_s14, %s1453_s13  ;;  %p242_p10 = scmp.eq.s32.totalorder %s241_s16, 0 }
  0x25   : > { %s269_s25 = sor.u32 %s268_s12, %s241_s16  ;;  %p1668_p12 = por %p282_p8, %p1630_p2 }
  0x26   : > { %p270_p11 = scmp.eq.s32.totalorder %s269_s25, 0  ;;  %p1680_p13 = por %p288_p9, %p1645_p6 }
  0x27   : > { %s1919_s9 = scalar_select %p1668_p12, 1, 0 }
  0x28   : > { %s1673_s26 = scalar_select %p242_p10, %s1473_s18, %s244_s28  }
  0x29   : > { %s1676_s21 = scalar_select %p270_p11, %s1461_s15, %s272_s24  }
  0x2a   : > { %1920 = sst [smem:[#allocation24_spill]] %s1673_s26  ;;  %p1028_p0 = scmp.ge.s32.totalorder %s1493_s23, 1 }
  0x2b   : > { %1921 = sst [smem:[#allocation25_spill]] %s1676_s21  ;;  %p296_p1 = scmp.lt.s32.totalorder %s1493_s23, 5 }
  0x2c   : > { %s1922_s30 = scalar_select %p1680_p13, 1, 0 }
  0x2d   : > { %s1923_s27 = sadd.s32 4294967295, %s1493_s23   ;;  %p1692_p2 = pnand %p1028_p0, %p296_p1 }
  0x2e   : > { %p1688_p4 = scmp.eq.s32.totalorder %s1923_s27, 0  ;;  %s1495_s24 = smov [#allocation6]  }
  0x2f   : > { %s330_s28 = sshll.u32 %s1495_s24, 4  ;;  %p1131_p5 = pneg %p1692_p2  ;;  %s331_s28 = int_to_ptr.vmem [resolvable:$true] %s330_s28 }
  0x30   : > { %s1496_s27 = smov [#allocation3]   ;;  %s1272_s25 = scalar_lea.vmem %s331_s28, 4096 }
  0x31   : > { %p1700_p6 = pnand %p1688_p4, %p1131_p5  ;;  %s314_s12 = sshll.u32 %s1496_s27, 4  ;;  %s315_s12 = int_to_ptr.vmem [resolvable:$true] %s314_s12 }
  0x32   : > { %p1273_p9 = scmp.ne.s32.totalorder %s331_s28, %s1272_s25  ;;  %p1280_p0 = scmp.lt.s32.totalorder %s331_s28, %s331_s28 }
  0x33   : > { %p1263_p8 = pneg %p1700_p6  ;;  %p1281_p1 = scmp.lt.s32.totalorder %s1272_s25, %s1272_s25 }
  0x35   : > { %p1275_p10 = pnand %p1273_p9, %p1263_p8  ;;  %p1282_p13 = por %p1281_p1, %p1280_p0 }
  0x37   : > { %p1276_p11 = pneg %p1275_p10 }
  0x39   : > { %p1283_p7 = pnand %p1282_p13, %p1276_p11 }
  0x3b   : > { %1286 = shalt.err (!%p1283_p7)
}
  0x3c   : > { %s1497_s24 = smov 256   ;;  %s1498_s22 = smov 16  }
  0x3d   : > { %s1927_s5 = sld [smem:[#allocation31_spill]]  ;;  %s1298_s18 = scalar_lea.vmem %s315_s12, 1024 }
  0x3e   : > { %p1299_p5 = scmp.ne.s32.totalorder %s315_s12, %s1298_s18  ;;  %p1306_p12 = scmp.lt.s32.totalorder %s315_s12, %s315_s12 }
  0x3f   : > { %p1307_p0 = scmp.lt.s32.totalorder %s1298_s18, %s1298_s18 }
  0x40   : > { %p1301_p9 = pnand %p1299_p5, %p1263_p8 }
  0x41   : > { %p1308_p13 = por %p1307_p0, %p1306_p12 }
  0x42   : > { %p1302_p10 = pneg %p1301_p9 }
  0x43   : > { %1137 = dma.hbm_to_vmem [thread:$0]  (!%p1700_p6), %s1927_s5, 4096, %s331_s28, [#allocation7], %s1497_s24, %s1497_s24, %s1498_s22  }
  0x44   : > { %p1309_p7 = pnand %p1308_p13, %p1302_p10 }
  0x46   : > { %1312 = shalt.err (!%p1309_p7)
}
  0x47   : > { %s1499_s25 = smov 128   ;;  %s1500_s21 = smov 8  }
  0x48   : > { %s1928_s3 = sld [smem:[#allocation29_spill]]  ;;  %s1501_s22 = smov [#allocation8]  }
  0x49   : > { %s346_s28 = sshll.u32 %s1501_s22, 4  ;;  %s347_s28 = int_to_ptr.vmem [resolvable:$true] %s346_s28 }
  0x4a   : > { %s1324_s24 = scalar_lea.vmem %s347_s28, 4096  ;;  %p1332_p5 = scmp.lt.s32.totalorder %s347_s28, %s347_s28 }
  0x4b   : > { %p1325_p11 = scmp.ne.s32.totalorder %s347_s28, %s1324_s24  ;;  %p1333_p9 = scmp.lt.s32.totalorder %s1324_s24, %s1324_s24 }
  0x4d   : > { %p1327_p1 = pnand %p1325_p11, %p1263_p8  ;;  %p1334_p10 = por %p1333_p9, %p1332_p5 }
  0x4e   : > { %1134 = dma.hbm_to_vmem [thread:$0]  (!%p1700_p6), %s1928_s3, 1024, %s315_s12, [#allocation4], %s1499_s25, %s1499_s25, %s1500_s21  }
  0x4f   : > { %p1328_p12 = pneg %p1327_p1 }
  0x51   : > { %p1335_p0 = pnand %p1334_p10, %p1328_p12 }
  0x53   : > { %1338 = shalt.err (!%p1335_p0)
}
  0x54   : > { %1140 = dma.hbm_to_vmem [thread:$0]  (!%p1700_p6), %s1881_s7, 4096, %s347_s28, [#allocation7], %s1499_s25, %s1499_s25, %s1500_s21  }
  0x55   : > { %376 = sbr.rel (%p1692_p2) target bundleno = 950 (0x3b6), region = 56 }
  0x5a   : > { %1436 = dma.done.wait (%p1688_p4), [#allocation4], 1024  }
  0x5b   : > { %1438 = vsyncadd (%p1688_p4), [#allocation4], 4294966272 }
  0x5c   : > { %1440 = dma.done.wait (%p1688_p4), [#allocation7], 8192  }
  0x5d   : > { %1442 = vsyncadd (%p1688_p4), [#allocation7], 4294959104  ;;  %s420_s15 = sand.u32 1, %s1469_s17   ;;  %s1898_s21 = sand.u32 1, %s1457_s14  }
  0x5e   : > { %s1037_s29 = sshll.u32 %s1898_s21, 4  ;;  %p429_p2 = scmp.lt.s32.totalorder %s1481_s20, 1 }
  0x5f   : > { %p431_p6 = scmp.lt.s32.totalorder %s1477_s19, 1  ;;  %s1929_s0 = sld [smem:[#allocation26_spill]] }
  0x60   : > { %s430_s11 = scalar_select %p429_p2, %s1481_s20, 1 }
  0x61   : > { %s432_s12 = scalar_select %p431_p6, %s1477_s19, 1 }
  0x62   : > { %s1038_s25 = sshll.u32 %s430_s11, 1  ;;  %s1753_s18 = scalar_lea.vmem [#allocation9], %s420_s15 }
  0x63   : > { %s434_s26 = sadd.s32 %s1038_s25, %s432_s12  ;;  %s1755_s27 = scalar_lea.vmem [#allocation10], %s1037_s29 }
  0x64   : > { %s1039_s16 = sshll.u32 %s434_s26, 3  ;;  %p1040_p4 = scmp.ne.s32.totalorder %s1477_s19, 0 }
  0x65   : > { %s436_s24 = scalar_lea.vmem %s1929_s0, %s1039_s16 }
  0x66   : > { %440 = sbr.rel (%p1040_p4) target bundleno = 111 (0x6f), region = 72 }
  0x6b   : > { %v441_v0 = vlaneseq  ;;  %v1502_v1 = vmov 0.0  }
  0x6d   : > { %vm443_vm0 = vcmp.lt.s32.totalorder %v441_v0, 256 }
  0x6e   : > { %445 = vst.msk [vmem:[#allocation2] sm:$0x3] %vm443_vm0, %v1502_v1 }
  0x6f PF: > { %v446_v2 = vld [vmem:[%s436_s24] sm:$0xff]  ;;  %v1503_v3 = vmov 0   ;;  %v1504_v4 = vmov 2   ;;  %v1505_v6 = vmov 0.0   ;;  %v493_v7 = vld [vmem:[#allocation3 + $0x30] sm:$0xff]  ;;  %v492_v8 = vld [vmem:[#allocation3 + $0x28] sm:$0xff]  ;;  %v453_v42 = vlaneseq }
  0x70   : > { %1257 = vset.pattern.permute.xlu0 %v1503_v3  ;;  %1259 = vset.pattern.permute.xlu1 %v1504_v4  ;;  %v494_v5 = vld [vmem:[#allocation3 + $0x38] sm:$0xff]  ;;  %v1506_v9 = vmov 1   ;;  %v491_v10 = vld [vmem:[#allocation3 + $0x20] sm:$0xff]  ;;  %v489_v12 = vld [vmem:[#allocation3 + $0x10] sm:$0xff]  ;;  %vm1507_vm1 = vmmov 0   ;;  %s1930_s1 = sld [smem:[#allocation27_spill]] }
  0x71   : > { %450 = vperm.xlu0 %1257, %v446_v2   ;;  %477 = vperm.xlu1 %1259, %v446_v2   ;;  %v490_v11 = vld [vmem:[#allocation3 + $0x18] sm:$0xff]  ;;  %v607_v14 = vld [vmem:[#allocation6 + $0xf0] sm:$0xff]  ;;  %v606_v15 = vld [vmem:[#allocation6 + $0xe8] sm:$0xff]  ;;  %v1759_v43 = vshrl.u32 %v453_v42, 7  ;;  %s1931_s2 = sld [smem:[#allocation28_spill]]  ;;  %vm502_vm2 = vcmask 523264  }
  0x72   : > { %1096 = vmatprep.subr.mxu0 %v1505_v6  ;;  %685 = vmatprep.mubr.f32.mxu1 %v1505_v6  ;;  %v608_v13 = vld [vmem:[#allocation6 + $0xf8] sm:$0xff]  ;;  %v605_v16 = vld [vmem:[#allocation6 + $0xe0] sm:$0xff]  ;;  %v488_v17 = vld [vmem:[#allocation3 + $0x8] sm:$0xff]  ;;  %s1932_s4 = sld [smem:[#allocation30_spill]]  ;;  %vm730_vm3 = vcmp.lt.s32.totalorder %v453_v42, 256  ;;  %p1044_p8 = scmp.ne.s32.totalorder %s1477_s19, 1 }
  0x73   : > { %1097 = vmatpush3.msra.mxu0 %v494_v5  ;;  %1112 = vmatprep.mubr.msk.f32.mxu0 %vm1507_vm1, %v1505_v6  ;;  %v604_v18 = vld [vmem:[#allocation6 + $0xd8] sm:$0xff]  ;;  %v603_v19 = vld [vmem:[#allocation6 + $0xd0] sm:$0xff]  ;;  %v487_v20 = vld [vmem:[#allocation3] sm:$0xff]  ;;  %v1762_v44 = vsub.s32 0, %v1759_v43  ;;  %v1769_v47 = vsub.s32 1, %v1759_v43  ;;  %v482_v48 = vsub.s32 2, %v1759_v43 }
  0x74   : > { %1098 = vmatprep.subr.mxu0 %v1505_v6  ;;  %621 = vmatprep.subr.mxu1 %v608_v13  ;;  %v602_v21 = vld [vmem:[#allocation6 + $0xc8] sm:$0xff]  ;;  %v601_v22 = vld [vmem:[#allocation6 + $0xc0] sm:$0xff]  ;;  %v600_v23 = vld [vmem:[#allocation6 + $0xb8] sm:$0xff] }
  0x75   : > { %1258 = vset.pattern.permute.xlu0 %v1506_v9  ;;  %1099 = vmatpush3.msra.mxu0 %v493_v7  ;;  %v599_v24 = vld [vmem:[#allocation6 + $0xb0] sm:$0xff]  ;;  %v598_v25 = vld [vmem:[#allocation6 + $0xa8] sm:$0xff]  ;;  %v597_v26 = vld [vmem:[#allocation6 + $0xa0] sm:$0xff] }
  0x76   : > { %467 = vperm.xlu0 %1258, %v446_v2   ;;  %1100 = vmatprep.subr.mxu0 %v1505_v6  ;;  %v596_v27 = vld [vmem:[#allocation6 + $0x98] sm:$0xff]  ;;  %v595_v28 = vld [vmem:[#allocation6 + $0x90] sm:$0xff]  ;;  %v594_v29 = vld [vmem:[#allocation6 + $0x88] sm:$0xff] }
  0x77   : > { %1101 = vmatpush3.msra.mxu0 %v492_v8  ;;  %622 = vmatpush1.msra.mxu1 %v607_v14  ;;  %v593_v30 = vld [vmem:[#allocation6 + $0x80] sm:$0xff]  ;;  %v592_v31 = vld [vmem:[#allocation6 + $0x78] sm:$0xff]  ;;  %v591_v32 = vld [vmem:[#allocation6 + $0x70] sm:$0xff] }
  0x78   : > { %1102 = vmatprep.subr.mxu0 %v1505_v6  ;;  %623 = vmatprep.subr.mxu1 %v606_v15  ;;  %v590_v33 = vld [vmem:[#allocation6 + $0x68] sm:$0xff]  ;;  %v589_v34 = vld [vmem:[#allocation6 + $0x60] sm:$0xff]  ;;  %v588_v35 = vld [vmem:[#allocation6 + $0x58] sm:$0xff] }
  0x79   : > { %1103 = vmatpush3.msra.mxu0 %v491_v10  ;;  %624 = vmatpush1.msra.mxu1 %v605_v16  ;;  %v587_v36 = vld [vmem:[#allocation6 + $0x50] sm:$0xff]  ;;  %v586_v37 = vld [vmem:[#allocation6 + $0x48] sm:$0xff]  ;;  %v585_v38 = vld [vmem:[#allocation6 + $0x40] sm:$0xff] }
  0x7a   : > { %1104 = vmatprep.subr.mxu0 %v1505_v6  ;;  %1260 = vset.pattern.permute.xlu0 %v1504_v4  ;;  %v584_v39 = vld [vmem:[#allocation6 + $0x38] sm:$0xff]  ;;  %v583_v40 = vld [vmem:[#allocation6 + $0x30] sm:$0xff]  ;;  %v582_v41 = vld [vmem:[#allocation6 + $0x28] sm:$0xff] }
  0x7b   : > { %1105 = vmatpush3.msra.mxu0 %v490_v11  ;;  %625 = vmatprep.subr.mxu1 %v604_v18  ;;  %v447_v45 = vld [vmem:[%s1930_s1] sm:$0x7]  ;;  %v579_v0 = vld [vmem:[#allocation6 + $0x10] sm:$0xff]  ;;  %v578_v1 = vld [vmem:[#allocation6 + $0x8] sm:$0xff] }
  0x7c   : > { %1106 = vmatprep.subr.mxu0 %v1505_v6  ;;  %626 = vmatpush1.msra.mxu1 %v603_v19  ;;  %v456_v46 = vrot.slane %v447_v45, %v1762_v44  ;;  %v473_v51 = vrot.slane %v447_v45, %v1769_v47  ;;  %v483_v52 = vrot.slane %v447_v45, %v482_v48  ;;  %v1041_v53 = vld [vmem:[%s1931_s2] ss:$0 sm:$0xff]  ;;  %v581_v62 = vld [vmem:[#allocation6 + $0x20] sm:$0xff] }
  0x7d   : > { %1107 = vmatpush3.msra.mxu0 %v489_v12  ;;  %627 = vmatprep.subr.mxu1 %v602_v21  ;;  %v580_v63 = vld [vmem:[#allocation6 + $0x18] sm:$0xff]  ;;  %v577_v2 = vld [vmem:[#allocation6] sm:$0xff] }
  0x7e   : > { %1108 = vmatprep.subr.mxu0 %v1505_v6  ;;  %628 = vmatpush1.msra.mxu1 %v601_v22  ;;  %v1042_v3 = vld [vmem:[%s1932_s4] ss:$0 sm:$0xff]  ;;  %v1508_v22 = vmov 1966171168  }
  0x7f   : > { %1109 = vmatpush3.msra.mxu0 %v488_v17  ;;  %629 = vmatprep.subr.mxu1 %v600_v23  ;;  %v609_v8 = vld [vmem:[%s1880_s6] sm:$0x3]  ;;  %v713_v23 = vunpack.c.l.s4 %v1508_v22 }
  0x80   : > { %1110 = vmatprep.subr.mxu0 %v1505_v6  ;;  %630 = vmatpush1.msra.mxu1 %v599_v24  ;;  %v614_v9 = vrot.slane %v609_v8, %v1762_v44  ;;  %v618_v10 = vrot.slane %v609_v8, %v1769_v47 }
  0x81   : > { %1111 = vmatpush3.msra.mxu0 %v487_v20  ;;  %631 = vmatprep.subr.mxu1 %v598_v25 }
  0x82   : > { %632 = vmatpush1.msra.mxu1 %v597_v26 }
  0x83   : > { %633 = vmatprep.subr.mxu1 %v596_v27 }
  0x84   : > { %634 = vmatpush1.msra.mxu1 %v595_v28  ;;  %v714_v28 = vunpack.c.0.s8 %v713_v23 }
  0x85   : > { %635 = vmatprep.subr.mxu1 %v594_v29 }
  0x86   : > { %636 = vmatpush1.msra.mxu1 %v593_v30 }
  0x87   : > { %637 = vmatprep.subr.mxu1 %v592_v31 }
  0x88   : > { %638 = vmatpush1.msra.mxu1 %v591_v32  ;;  %v717_v32 = vsub.s32 %v714_v28, %v1759_v43 }
  0x89   : > { %639 = vmatprep.subr.mxu1 %v590_v33 }
  0x8a   : > { %640 = vmatpush1.msra.mxu1 %v589_v34 }
  0x8b   : > { %641 = vmatprep.subr.mxu1 %v588_v35  ;;  %v696_v35 = vld [vmem:[#allocation2] sm:$0x3] }
  0x8c   : > { %642 = vmatpush1.msra.mxu1 %v587_v36 }
  0x8d   : > { %643 = vmatprep.subr.mxu1 %v586_v37 }
  0x8e   : > { %644 = vmatpush1.msra.mxu1 %v585_v38 }
  0x8f   : > { %645 = vmatprep.subr.mxu1 %v584_v39 }
  0x90   : > { %646 = vmatpush1.msra.mxu1 %v583_v40 }
  0x91   : > { %647 = vmatprep.subr.mxu1 %v582_v41 }
  0x92   : > { %648 = vmatpush1.msra.mxu1 %v581_v62 }
  0x93   : > { %649 = vmatprep.subr.mxu1 %v580_v63 }
  0x94   : > { %650 = vmatpush1.msra.mxu1 %v579_v0 }
  0x95   : > { %651 = vmatprep.subr.mxu1 %v578_v1 }
  0x96   : > { %652 = vmatpush1.msra.mxu1 %v577_v2 }
  0xec   : > { %v451_v49 = vpop.permute.xlu0 %450  ;;  %v478_v54 = vpop.permute.xlu1 %477 }
  0xed   : > { %v457_v50 = vmul.f32 %v456_v46, %v451_v49  ;;  %v484_v58 = vmul.f32 %v483_v52, %v478_v54 }
  0xef   : > { %v465_v56 = vadd.f32 %v1041_v53, %v457_v50 }
  0xf1   : > { %v468_v55 = vpop.permute.xlu0 %467 }
  0xf2   : > { %v474_v57 = vmul.f32 %v473_v51, %v468_v55 }
  0xf4   : > { %v475_v59 = vadd.f32 %v474_v57, %v465_v56 }
  0xf6   : > { %v485_v60 = vadd.f32 %v484_v58, %v475_v59 }
  0xf8   : > { %v486_v61 = vmax.f32 %v485_v60, 0.0 }
  0xfa   : > { %1113 = vmatmul.mubr.msk.f32.vlgmr.msra.gmra.mxu0 %vm502_vm2, %v486_v61 }
 0x1ba   : > { %v572_v4 = vpop.f32.mrf.mxu0 }
 0x1bb   : > { %v573_v5 = vadd.f32 %v1042_v3, %v572_v4 }
 0x1bc   : > { %v1114_v6 = vpop.f32.mrf.mxu0 }
 0x1bd   : > { %v576_v7 = vmax.f32 %v573_v5, 0.0 }
 0x1bf   : > { %686 = vmatmul.mubr.f32.vlgmr.msra.gmra.mxu1 %v576_v7 }
 0x27f   : > { %v687_v11 = vpop.f32.mrf.mxu1 }
 0x280   : > { %v688_v12 = vadd.f32 %v687_v11, %v614_v9 }
 0x281   : > { %v689_v13 = vpop.f32.mrf.mxu1 }
 0x282   : > { %v692_v14 = vmax.f32 %v688_v12, 0.0  ;;  %v690_v15 = vadd.f32 %v689_v13, %v618_v10 }
 0x284   : > { %694 = vst [vmem:[%s1755_s27] sm:$0xff] %v692_v14  ;;  %v697_v16 = vrot.slane %v692_v14, 4  ;;  %v693_v17 = vmax.f32 %v690_v15, 0.0 }
 0x286   : > { %v698_v18 = vadd.f32 %v697_v16, %v692_v14  ;;  %695 = vst [vmem:[%s1755_s27 + $0x8] sm:$0xff] %v693_v17  ;;  %v703_v19 = vrot.slane %v693_v17, 4 }
 0x288   : > { %v699_v20 = vrot.slane %v698_v18, 2  ;;  %v704_v21 = vadd.f32 %v703_v19, %v693_v17 }
 0x28a   : > { %v700_v24 = vadd.f32 %v699_v20, %v698_v18  ;;  %v705_v25 = vrot.slane %v704_v21, 2 }
 0x28c   : > { %v701_v26 = vrot.slane %v700_v24, 1  ;;  %v706_v27 = vadd.f32 %v705_v25, %v704_v21 }
 0x28e   : > { %v707_v29 = vrot.slane %v706_v27, 1  ;;  %v702_v30 = vadd.f32 %v701_v26, %v700_v24 }
 0x290   : > { %v708_v31 = vadd.f32 %v707_v29, %v706_v27 }
 0x292   : > { %v711_v33 = vcombine.low %v702_v30, %v708_v31 }
 0x294   : > { %v718_v34 = vrot.slane %v711_v33, %v717_v32 }
 0x296   : > { %v725_v36 = vrot.slane %v718_v34, %v717_v32  ;;  %736 = sbr.rel (%p1044_p8) target bundleno = 900 (0x384), region = 76 }
 0x298   : > { %v727_v37 = vadd.f32 %v725_v36, %v696_v35 }
 0x29a   : > { %732 = vst.msk [vmem:[#allocation2] sm:$0x3] %vm730_vm3, %v727_v37 }
 0x29b   : > { %v770_v38 = vld [vmem:[#allocation8 + $0xf8] sm:$0xff]  ;;  %v769_v40 = vld [vmem:[#allocation8 + $0xf0] sm:$0xff]  ;;  %v768_v45 = vld [vmem:[#allocation8 + $0xe8] sm:$0xff] }
 0x29c   : > { %v754_v39 = vld [vmem:[#allocation8 + $0x78] sm:$0xff]  ;;  %1061 = vmatprep.subr.mxu0 %v770_v38  ;;  %v753_v41 = vld [vmem:[#allocation8 + $0x70] sm:$0xff]  ;;  %v752_v43 = vld [vmem:[#allocation8 + $0x68] sm:$0xff] }
 0x29d   : > { %1062 = vmatpush3.msra.mxu0 %v754_v39  ;;  %v767_v46 = vld [vmem:[#allocation8 + $0xe0] sm:$0xff]  ;;  %v766_v42 = vld [vmem:[#allocation8 + $0xd8] sm:$0xff]  ;;  %v765_v50 = vld [vmem:[#allocation8 + $0xd0] sm:$0xff] }
 0x29e   : > { %1063 = vmatprep.subr.mxu0 %v769_v40  ;;  %v751_v48 = vld [vmem:[#allocation8 + $0x60] sm:$0xff]  ;;  %v750_v49 = vld [vmem:[#allocation8 + $0x58] sm:$0xff]  ;;  %v749_v51 = vld [vmem:[#allocation8 + $0x50] sm:$0xff] }
 0x29f   : > { %1064 = vmatpush3.msra.mxu0 %v753_v41  ;;  %v764_v52 = vld [vmem:[#allocation8 + $0xc8] sm:$0xff]  ;;  %v763_v56 = vld [vmem:[#allocation8 + $0xc0] sm:$0xff]  ;;  %v762_v59 = vld [vmem:[#allocation8 + $0xb8] sm:$0xff] }
 0x2a0   : > { %1065 = vmatprep.subr.mxu0 %v768_v45  ;;  %v748_v54 = vld [vmem:[#allocation8 + $0x48] sm:$0xff]  ;;  %v747_v57 = vld [vmem:[#allocation8 + $0x40] sm:$0xff]  ;;  %v746_v60 = vld [vmem:[#allocation8 + $0x38] sm:$0xff] }
 0x2a1   : > { %1066 = vmatpush3.msra.mxu0 %v752_v43  ;;  %v737_v53 = vld [vmem:[#allocation2] sm:$0x3]  ;;  %v761_v61 = vld [vmem:[#allocation8 + $0xb0] sm:$0xff]  ;;  %v760_v63 = vld [vmem:[#allocation8 + $0xa8] sm:$0xff] }
 0x2a2   : > { %1067 = vmatprep.subr.mxu0 %v767_v46  ;;  %v738_v55 = vmul.f32 0.0625, %v737_v53  ;;  %v745_v62 = vld [vmem:[#allocation8 + $0x30] sm:$0xff]  ;;  %v744_v0 = vld [vmem:[#allocation8 + $0x28] sm:$0xff]  ;;  %v759_v1 = vld [vmem:[#allocation8 + $0xa0] sm:$0xff] }
 0x2a3   : > { %1068 = vmatpush3.msra.mxu0 %v751_v48  ;;  %v743_v2 = vld [vmem:[#allocation8 + $0x20] sm:$0xff]  ;;  %v758_v3 = vld [vmem:[#allocation8 + $0x98] sm:$0xff]  ;;  %v757_v4 = vld [vmem:[#allocation8 + $0x90] sm:$0xff] }
 0x2a4   : > { %1069 = vmatprep.subr.mxu0 %v766_v42  ;;  %v780_v58 = vrot.slane %v738_v55, %v1769_v47  ;;  %v742_v47 = vld [vmem:[#allocation8 + $0x18] sm:$0xff]  ;;  %v741_v5 = vld [vmem:[#allocation8 + $0x10] sm:$0xff]  ;;  %v756_v6 = vld [vmem:[#allocation8 + $0x88] sm:$0xff]  ;;  %v776_v10 = vrot.slane %v738_v55, %v1762_v44 }
 0x2a5   : > { %1070 = vmatpush3.msra.mxu0 %v750_v49  ;;  %v740_v7 = vld [vmem:[#allocation8 + $0x8] sm:$0xff]  ;;  %v755_v8 = vld [vmem:[#allocation8 + $0x80] sm:$0xff]  ;;  %v771_v12 = vld [vmem:[%s1882_s8] sm:$0x1] }
 0x2a6   : > { %1071 = vmatprep.subr.mxu0 %v765_v50  ;;  %847 = vmatprep.mubr.f32.mxu0 %v780_v58  ;;  %v739_v9 = vld [vmem:[#allocation8] sm:$0xff] }
 0x2a7   : > { %1072 = vmatpush3.msra.mxu0 %v749_v51 }
 0x2a8   : > { %1073 = vmatprep.subr.mxu0 %v764_v52 }
 0x2a9   : > { %1074 = vmatpush3.msra.mxu0 %v748_v54 }
 0x2aa   : > { %1075 = vmatprep.subr.mxu0 %v763_v56 }
 0x2ab   : > { %1076 = vmatpush3.msra.mxu0 %v747_v57 }
 0x2ac   : > { %1077 = vmatprep.subr.mxu0 %v762_v59 }
 0x2ad   : > { %1078 = vmatpush3.msra.mxu0 %v746_v60 }
 0x2ae   : > { %1079 = vmatprep.subr.mxu0 %v761_v61 }
 0x2af   : > { %1080 = vmatpush3.msra.mxu0 %v745_v62 }
 0x2b0   : > { %1081 = vmatprep.subr.mxu0 %v760_v63 }
 0x2b1   : > { %1082 = vmatpush3.msra.mxu0 %v744_v0 }
 0x2b2   : > { %1083 = vmatprep.subr.mxu0 %v759_v1 }
 0x2b3   : > { %1084 = vmatpush3.msra.mxu0 %v743_v2 }
 0x2b4   : > { %1085 = vmatprep.subr.mxu0 %v758_v3 }
 0x2b5   : > { %1086 = vmatpush3.msra.mxu0 %v742_v47 }
 0x2b6   : > { %1087 = vmatprep.subr.mxu0 %v757_v4 }
 0x2b7   : > { %1088 = vmatpush3.msra.mxu0 %v741_v5 }
 0x2b8   : > { %1089 = vmatprep.subr.mxu0 %v756_v6 }
 0x2b9   : > { %1090 = vmatpush3.msra.mxu0 %v740_v7 }
 0x2ba   : > { %1091 = vmatprep.subr.mxu0 %v755_v8 }
 0x2bb   : > { %1092 = vmatpush3.msra.mxu0 %v739_v9 }
 0x2bc   : > { %848 = vmatmul.mubr.f32.vlgmr.msra.gmra.mxu0 %v776_v10 }
 0x37c   : > { %v1093_v11 = vpop.f32.mrf.mxu0 }
 0x37e   : > { %v1094_v13 = vpop.f32.mrf.mxu0 }
 0x37f   : > { %v1095_v14 = vadd.f32 %v1094_v13, %v1093_v11 }
 0x381   : > { %v850_v15 = vadd.f32 %v1095_v14, %v771_v12 }
 0x383   : > { %853 = vst [vmem:[%s1753_s18] sm:$0x1] %v850_v15 }
 0x384 PF: > { %s1046_s12 = sshll.u32 %s1481_s20, 4  ;;  %s1934_s16 = sld [smem:[#allocation32_spill]] }
 0x385   : > { %s872_s21 = sshll.u32 %s1753_s18, 4  ;;  %s855_s0 = scalar_lea.sflag [#allocation5], %s420_s15  ;;  %s873_s21 = int_to_ptr.vmem [resolvable:$true] %s872_s21 }
 0x386   : > { %s1339_s24 = scalar_lea.vmem %s873_s21, 16  ;;  %s1509_s29 = smov [#allocation9]  }
 0x387   : > { %p1340_p13 = scmp.ne.s32.totalorder %s873_s21, %s1339_s24  ;;  %s1343_s1 = sshll.u32 %s1509_s29, 4  ;;  %s1344_s1 = int_to_ptr.vmem [resolvable:$false] %s1343_s1 }
 0x388   : > { %s1345_s2 = scalar_lea.vmem %s1344_s1, 32  ;;  %p1346_p1 = scmp.lt.s32.totalorder %s873_s21, %s1344_s1 }
 0x389   : > { %p1341_p7 = pnand %p1340_p13, %p1639_p3  ;;  %p1347_p12 = scmp.lt.s32.totalorder %s1345_s2, %s1339_s24 }
 0x38a   : > { %s1935_s28 = smov %s1934_s16  ;;  %s870_s22 = scalar_lea.hbm %s1934_s16, %s1046_s12 }
 0x38b   : > { %p1342_p11 = pneg %p1341_p7  ;;  %p1348_p5 = por %p1347_p12, %p1346_p1 }
 0x38d   : > { %p1349_p9 = pnand %p1348_p5, %p1342_p11 }
 0x38f   : > { %1352 = shalt.err (!%p1349_p9)
}
 0x390   : > { %s1353_s25 = scalar_lea.hbm %s870_s22, 16  ;;  %s1357_s12 = scalar_lea.hbm %s1935_s28, 32 }
 0x391   : > { %p1354_p10 = scmp.ne.s32.totalorder %s870_s22, %s1353_s25  ;;  %p1358_p6 = scmp.lt.s32.totalorder %s870_s22, %s1935_s28 }
 0x392   : > { %p1359_p4 = scmp.lt.s32.totalorder %s1357_s12, %s1353_s25 }
 0x393   : > { %p1355_p0 = pnand %p1354_p10, %p1639_p3 }
 0x394   : > { %p1360_p8 = por %p1359_p4, %p1358_p6 }
 0x395   : > { %p1356_p2 = pneg %p1355_p0 }
 0x397   : > { %p1361_p13 = pnand %p1360_p8, %p1356_p2 }
 0x399   : > { %1364 = shalt.err (!%p1361_p13)
}
 0x39a   : > { %1127 = dma.vmem_to_hbm [thread:$0]  (%p1639_p3), %s873_s21, 16, %s870_s22, %s855_s0  }
 0x39b   : > { %s1047_s1 = sshll.u32 %s1477_s19, 1  ;;  %s1048_s2 = sshll.u32 %s1481_s20, 2 }
 0x39c   : > { %s884_s24 = sadd.s32 %s1048_s2, %s1047_s1  ;;  %s888_s29 = sshll.u32 %s1755_s27, 4  ;;  %s889_s29 = int_to_ptr.vmem [resolvable:$true] %s888_s29 }
 0x39d   : > { %s1049_s15 = sshll.u32 %s884_s24, 7  ;;  %s1936_s25 = sld [smem:[#allocation33_spill]] }
 0x39e   : > { %s1937_s16 = sand.u32 1, %s1457_s14   ;;  %s1365_s4 = scalar_lea.vmem %s889_s29, 256 }
 0x39f   : > { %s859_s3 = scalar_lea.sflag [#allocation11], %s1937_s16  ;;  %p1366_p7 = scmp.ne.s32.totalorder %s889_s29, %s1365_s4 }
 0x3a0   : > { %p1938_p11 = scmp.ne.s32.totalorder %s1919_s9, 0  ;;  %s1510_s11 = smov [#allocation10]  }
 0x3a1   : > { %s1369_s5 = sshll.u32 %s1510_s11, 4  ;;  %s1370_s5 = int_to_ptr.vmem [resolvable:$false] %s1369_s5 }
 0x3a2   : > { %p1367_p1 = pnand %p1366_p7, %p1938_p11  ;;  %s1371_s0 = scalar_lea.vmem %s1370_s5, 512 }
 0x3a3   : > { %s886_s12 = scalar_lea.hbm %s1936_s25, %s1049_s15  ;;  %p1372_p3 = scmp.lt.s32.totalorder %s889_s29, %s1370_s5 }
 0x3a4   : > { %p1368_p12 = pneg %p1367_p1  ;;  %p1373_p5 = scmp.lt.s32.totalorder %s1371_s0, %s1365_s4 }
 0x3a6   : > { %p1374_p9 = por %p1373_p5, %p1372_p3 }
 0x3a8   : > { %p1375_p10 = pnand %p1374_p9, %p1368_p12 }
 0x3aa   : > { %1378 = shalt.err (!%p1375_p10)
}
 0x3ab   : > { %s1379_s19 = scalar_lea.hbm %s886_s12, 256  ;;  %s1383_s27 = scalar_lea.hbm %s1936_s25, 1024 }
 0x3ac   : > { %p1380_p0 = scmp.ne.s32.totalorder %s886_s12, %s1379_s19  ;;  %p1384_p4 = scmp.lt.s32.totalorder %s886_s12, %s1936_s25 }
 0x3ad   : > { %p1385_p8 = scmp.lt.s32.totalorder %s1383_s27, %s1379_s19 }
 0x3ae   : > { %p1381_p2 = pnand %p1380_p0, %p1938_p11 }
 0x3af   : > { %p1386_p13 = por %p1385_p8, %p1384_p4 }
 0x3b0   : > { %p1382_p6 = pneg %p1381_p2 }
 0x3b2   : > { %p1387_p7 = pnand %p1386_p13, %p1382_p6 }
 0x3b4   : > { %1390 = shalt.err (!%p1387_p7)
}
 0x3b5   : > { %1128 = dma.vmem_to_hbm [thread:$0]  (%p1938_p11), %s889_s29, 256, %s886_s12, %s859_s3  }
 0x3b6 PF: > { %s1939_s4 = sld [smem:[#allocation17_spill]]  ;;  %p1154_p1 = scmp.ge.s32.totalorder %s1493_s23, 2 }
 0x3b7   : > { %p1940_p12 = scmp.ne.s32.totalorder %s1918_s10, 0 }
 0x3b9   : > { %p1142_p3 = pnand %p1154_p1, %p1940_p12 }
 0x3bb   : > { %p1143_p5 = pneg %p1142_p3 }
 0x3bc   : > { %s900_s5 = sand.u32 1, %s1939_s4  }
 0x3bd   : > { %s901_s2 = scalar_lea.sflag [#allocation5], %s900_s5 }
 0x3be   : > { %1444 = dma.done.wait (%p1143_p5), %s901_s2, 16  }
 0x3bf   : > { %1446 = vsyncadd (%p1143_p5), %s901_s2, 4294967280  ;;  %s908_s24 = sand.u32 1, %s1453_s13   ;;  %p1941_p9 = scmp.ne.s32.totalorder %s1922_s30, 0 }
 0x3c0   : > { %s909_s9 = scalar_lea.sflag [#allocation11], %s908_s24 }
 0x3c1   : > { %p1145_p10 = pnand %p1154_p1, %p1941_p9 }
 0x3c3   : > { %p1146_p0 = pneg %p1145_p10 }
 0x3c5   : > { %1448 = dma.done.wait (%p1146_p0), %s909_s9, 256  }
 0x3c6   : > { %1450 = vsyncadd (%p1146_p0), %s909_s9, 4294967040  ;;  %s29_s23 = sadd.s32 1, %s1493_s23   ;;  %s1942_s3 = sld [smem:[#allocation16_spill]] }
 0x3c7   : > { %p26_p11 = scmp.ge.s32.totalorder %s29_s23, 6   ;;  %s1943_s15 = sld [smem:[#allocation25_spill]] }
 0x3c8   : > { %s1944_s10 = sld [smem:[#allocation18_spill]]  ;;  %s1950_s13 = smov %s1457_s14 }
 0x3c9   : > { %s1945_s18 = sld [smem:[#allocation24_spill]]  ;;  %s1952_s16 = smov %s1469_s17 }
 0x3ca   : > { %s1946_s19 = sld [smem:[#allocation19_spill]]  ;;  %28 = sbr.rel (!%p26_p11) target bundleno = 20 (0x14), region = 129 }
 0x3cb   : > { %s1947_s20 = sld [smem:[#allocation20_spill]] }
 0x3cc   : > { %s1948_s21 = sld [smem:[#allocation21_spill]]  ;;  %s1951_s14 = smov %s1942_s3 }
 0x3cd   : > { %s1949_s22 = sld [smem:[#allocation23_spill]] }
 0x3ce   : > { %s1953_s17 = smov %s1944_s10 }
 0x3cf   :  { %914 = vsyncpa [#allocation4], 1 }
 0x3d0   :  { %916 = vsyncpa [#allocation4 + $0x1], 1 }
 0x3d1   :  { %917 = vsyncpa [#allocation7], 1 }
 0x3d2   :  { %918 = vsyncpa [#allocation5], 1 }
 0x3d3   :  { %920 = vsyncpa [#allocation5 + $0x1], 1 }
 0x3d4   :  { %921 = vsyncpa [#allocation11], 1 }
 0x3d5   :  { %923 = vsyncpa [#allocation11 + $0x1], 1 }

</bundles_post_ra>
